<compile_context>
chip_gen: v6e
topology: v6e:2x2x1
jax: 0.10.0
libtpu: 0.0.40
codegen_flags: <defaults>
</compile_context>

<pallas_src>
import jax
import jax.numpy as jnp
from jax.experimental import pallas as pl
from jax.experimental.pallas import tpu as pltpu


def _film_fma_kernel(gb_ref, v_ref, o_ref):
    """One grid step = one (batch, row-tile) of the lane-folded video tensor.

    gb_ref: [1, 2, dl]  packed (gamma; beta) for this batch element (f32)
    v_ref:  [1, TL, dl] video tile
    o_ref:  [1, TL, dl] modulated output tile
    """
    gb = gb_ref[0]                       # [2, dl]   (f32)
    gamma = gb[0:1, :]                   # [1, dl]   sublane slice (free)
    beta = gb[1:2, :]                    # [1, dl]
    # Broadcast FMA over the TL rows; single cast on store.  Kept in f32: the
    # kernel is HBM-bound, VALU has huge slack on all generations.
    o_ref[0] = (v_ref[0] * gamma + beta).astype(o_ref.dtype)


def _vmem_budget():
    """(tile_target_bytes, vmem_limit_bytes) sized per TPU generation."""
    try:
        vmem = int(getattr(pltpu.get_tpu_info(), "vmem_capacity_bytes", 0)) or (64 << 20)
    except Exception:  # pragma: no cover - conservative fallback off-TPU
        vmem = 64 << 20
    if vmem >= 100 * (1 << 20):
        # v5e / v6e: 128 MiB VMEM -> 8 MiB tiles (~32 MiB resident with 2 in + 2 out bufs).
        return 8 << 20, 64 << 20
    # v7x: 64 MiB physical / 32 MiB scoped default -> cap tiles at 4 MiB.
    return 4 << 20, 32 << 20


def _pick_rows_tile(n_rows, row_bytes, itemsize, target_bytes, split_rows):
    """Largest sublane-aligned row tile ~target_bytes (dtype-aware alignment)."""
    # Packed sublane alignment: f32 -> 8, bf16 -> 16, int8/fp8 -> 32.
    align = 8 * max(1, 4 // max(1, itemsize))
    rows = max(1, int(target_bytes // max(1, row_bytes)))
    if split_rows:
        # Ensure >= 2 programs along the row axis so both v7x TensorCores get work.
        rows = min(rows, pl.cdiv(n_rows, 2))
    if rows >= n_rows:
        return n_rows                     # full extent: always legal
    rows = (rows // align) * align
    return max(rows, min(align, n_rows))


def film_forward(video_feats, query_feats, weight, bias, *, pooling="mean",
                 min_pallas_bytes=1 << 20):
    """FiLM forward pass.

    video_feats: [B, L_v, d]
    query_feats: [B, L_q, d]
    weight:      [2d, d]   (torch nn.Linear convention)
    bias:        [2d]
    returns:     [B, L_v, d]
    """
    B, L_v, d = video_feats.shape

    # --- FiLM generator, hoisted to plain XLA (tiny GEMM, f32 accumulation) -------
    if pooling == "mean":
        pooled = jnp.mean(query_feats.astype(jnp.float32), axis=1)           # [B, d]
    elif pooling == "cls":
        pooled = query_feats[:, 0, :].astype(jnp.float32)                    # [B, d]
    else:
        raise ValueError(f"Unsupported pooling method: {pooling}")

    gb = pooled @ weight.astype(jnp.float32).T + bias.astype(jnp.float32)    # [B, 2d]
    gamma, beta = gb[:, :d], gb[:, d:]                                       # [B, d] f32

    itemsize = jnp.dtype(video_feats.dtype).itemsize
    total_bytes = B * L_v * d * itemsize

    # --- Fast path: tiny inputs don't amortize pallas_call / grid overhead --------
    if total_bytes < min_pallas_bytes:
        out = video_feats.astype(jnp.float32) * gamma[:, None, :] + beta[:, None, :]
        return out.astype(video_feats.dtype)

    # --- Lane folding: make the lane (last) dim a dense multiple of 128 -----------
    if d % 128 == 0:
        r = 1
    elif 128 % d == 0 and L_v % (128 // d) == 0:
        r = 128 // d
    else:
        r = 1  # TODO(synk): pad d up to a multiple of 128 for awkward feature sizes
    dl = r * d
    n_rows = L_v // r
    video_view = video_feats.reshape(B, n_rows, dl)          # contiguous, free reshape
    gamma_l = jnp.tile(gamma, (1, r)) if r > 1 else gamma    # [B, dl] f32
    beta_l = jnp.tile(beta, (1, r)) if r > 1 else beta       # [B, dl] f32
    gb_pack = jnp.stack([gamma_l, beta_l], axis=1)           # [B, 2, dl] f32

    # --- Per-generation tile size / VMEM budget ------------------------------------
    tile_target, vmem_limit = _vmem_budget()
    tl = _pick_rows_tile(n_rows, dl * itemsize, itemsize, tile_target,
                         split_rows=(B == 1))
    grid = (B, pl.cdiv(n_rows, tl))

    out = pl.pallas_call(
        _film_fma_kernel,
        out_shape=jax.ShapeDtypeStruct((B, n_rows, dl), video_feats.dtype),
        grid_spec=pltpu.PrefetchScalarGridSpec(
            num_scalar_prefetch=0,
            grid=grid,
            in_specs=[
                pl.BlockSpec((1, 2, dl), lambda b, lv: (b, 0, 0)),     # gamma/beta
                pl.BlockSpec((1, tl, dl), lambda b, lv: (b, lv, 0)),   # video tile
            ],
            out_specs=pl.BlockSpec((1, tl, dl), lambda b, lv: (b, lv, 0)),
        ),
        compiler_params=pltpu.CompilerParams(
            # Both axes independent -> shard across TensorCores (v7x megacore).
            dimension_semantics=("parallel", "parallel"),
            vmem_limit_bytes=vmem_limit,
        ),
    )(gb_pack, video_view)
    return out.reshape(B, L_v, d)


if __name__ == "__main__":
    key = jax.random.PRNGKey(0)
    k_v, k_q, k_w, k_b, k_v2, k_q2 = jax.random.split(key, 6)

    def reference(video, query, weight, bias):
        pooled = query.astype(jnp.float32).mean(axis=1)                      # [B, d]
        gb = pooled @ weight.astype(jnp.float32).T + bias.astype(jnp.float32)
        dd = video.shape[-1]
        gamma_r, beta_r = gb[:, :dd], gb[:, dd:]
        out = video.astype(jnp.float32) * gamma_r[:, None, :] + beta_r[:, None, :]
        return out.astype(video.dtype)

    # nn.Linear(d, 2d) parameters (torch convention: weight [2d, d]).
    B, L_v, L_q, d = 2, 16, 8, 32
    bound = 1.0 / (d ** 0.5)
    weight = jax.random.uniform(k_w, (2 * d, d), jnp.float32, -bound, bound)
    bias = jax.random.uniform(k_b, (2 * d,), jnp.float32, -bound, bound)

    # Case 1: the module's small shapes; force the Pallas path (exercises lane folding r=4).
    video = jax.random.normal(k_v, (B, L_v, d), dtype=jnp.float32)
    query = jax.random.normal(k_q, (B, L_q, d), dtype=jnp.float32)
    out = jax.block_until_ready(film_forward(video, query, weight, bias,
                                             min_pallas_bytes=0))
    ref = reference(video, query, weight, bias)
    assert out.shape == (B, L_v, d)
    assert jnp.allclose(out, ref, atol=1e-5, rtol=1e-5)

    # Case 2: B = 1 (exercises the L_v-axis split that keeps both v7x cores busy).
    video2 = jax.random.normal(k_v2, (1, 256, d), dtype=jnp.float32)
    query2 = jax.random.normal(k_q2, (1, L_q, d), dtype=jnp.float32)
    out2 = jax.block_until_ready(film_forward(video2, query2, weight, bias,
                                              min_pallas_bytes=0))
    ref2 = reference(video2, query2, weight, bias)
    assert out2.shape == (1, 256, d)
    assert jnp.allclose(out2, ref2, atol=1e-5, rtol=1e-5)

    print("KERNEL_OK")
</pallas_src>

<mosaic_0001>
module attributes {stable_mosaic.version = 11 : i64} {
  func.func @_film_fma_kernel(%arg0: i32, %arg1: i32, %arg2: memref<1x2x128xf32, #tpu.memory_space<vmem>>, %arg3: memref<1x4x128xf32, #tpu.memory_space<vmem>>, %arg4: memref<1x4x128xf32, #tpu.memory_space<vmem>>) attributes {dimension_semantics = [#tpu.dimension_semantics<parallel>, #tpu.dimension_semantics<parallel>], iteration_bounds = array<i64: 2, 1>, scalar_prefetch = 0 : i64, scratch_operands = 0 : i64, tpu.core_type = #tpu.core_type<tc>, window_params = [{transform_indices = @transform_0, window_bounds = array<i64: 1, 2, 128>}, {transform_indices = @transform_1, window_bounds = array<i64: 1, 4, 128>}, {transform_indices = @transform_2, window_bounds = array<i64: 1, 4, 128>}]} {
    %c0 = arith.constant 0 : index
    %c0_0 = arith.constant 0 : index
    %c0_1 = arith.constant 0 : index
    %0 = vector.load %arg2[%c0, %c0_0, %c0_1] : memref<1x2x128xf32, #tpu.memory_space<vmem>>, vector<1x2x128xf32>
    %1 = vector.shape_cast %0 : vector<1x2x128xf32> to vector<2x128xf32>
    %2 = vector.extract_strided_slice %1 {offsets = [0, 0], sizes = [1, 128], strides = [1, 1]} : vector<2x128xf32> to vector<1x128xf32>
    %3 = vector.extract_strided_slice %1 {offsets = [1, 0], sizes = [1, 128], strides = [1, 1]} : vector<2x128xf32> to vector<1x128xf32>
    %c0_2 = arith.constant 0 : index
    %c0_3 = arith.constant 0 : index
    %c0_4 = arith.constant 0 : index
    %4 = vector.load %arg3[%c0_2, %c0_3, %c0_4] : memref<1x4x128xf32, #tpu.memory_space<vmem>>, vector<1x4x128xf32>
    %5 = vector.shape_cast %4 : vector<1x4x128xf32> to vector<4x128xf32>
    %6 = vector.broadcast %2 : vector<1x128xf32> to vector<4x128xf32>
    %7 = arith.mulf %5, %6 : vector<4x128xf32>
    %8 = vector.broadcast %3 : vector<1x128xf32> to vector<4x128xf32>
    %9 = arith.addf %7, %8 : vector<4x128xf32>
    %c0_5 = arith.constant 0 : index
    %c0_6 = arith.constant 0 : index
    %c0_7 = arith.constant 0 : index
    %10 = vector.load %arg4[%c0_5, %c0_6, %c0_7] : memref<1x4x128xf32, #tpu.memory_space<vmem>>, vector<1x4x128xf32>
    %11 = vector.shape_cast %10 : vector<1x4x128xf32> to vector<4x128xf32>
    %12 = vector.shape_cast %9 : vector<4x128xf32> to vector<1x4x128xf32>
    tpu.vector_store %arg4[%c0_5, %c0_6, %c0_7], %12 {strides = array<i32>} : memref<1x4x128xf32, #tpu.memory_space<vmem>>, vector<1x4x128xf32>,
    return
  }
  func.func @transform_0(%arg0: i32, %arg1: i32) -> (i32, i32, i32) {
    %c0_i32 = arith.constant 0 : i32
    %c0_i32_0 = arith.constant 0 : i32
    %c0_i32_1 = arith.constant 0 : i32
    return %arg0, %c0_i32, %c0_i32_0 : i32, i32, i32
  }
  func.func @transform_1(%arg0: i32, %arg1: i32) -> (i32, i32, i32) {
    %c0_i32 = arith.constant 0 : i32
    %c0_i32_0 = arith.constant 0 : i32
    return %arg0, %arg1, %c0_i32 : i32, i32, i32
  }
  func.func @transform_2(%arg0: i32, %arg1: i32) -> (i32, i32, i32) {
    %c0_i32 = arith.constant 0 : i32
    %c0_i32_0 = arith.constant 0 : i32
    return %arg0, %arg1, %c0_i32 : i32, i32, i32
  }
}

</mosaic_0001>

<bundles_post_ra>
// kernel: tpu_custom_call.1
= control target key start
LH: loop header
LB: loop body
LE: loop exit
PB: predicated region body
PF: predicated region fallthrough
CT: control target
= control target key end

     0   :  { %7 = vsyncpa [#allocation3], 0  ;;  %s751_s0 = inlined_call_operand.hbm [shape: f32[2,2,128], index: 0, kind: input, shape index: {}]   ;;  %s752_s1 = inlined_call_operand.hbm [shape: f32[2,4,128], index: 1, kind: input, shape index: {}]   ;;  %s753_s2 = inlined_call_operand.hbm [shape: f32[2,4,128], index: 2, kind: output, shape index: {}]  }
   0x1   :  { %9 = vsyncpa [#allocation3 + $0x1], 0 }
   0x2   :  { %10 = vsyncpa [#allocation6], 0 }
   0x3   :  { %12 = vsyncpa [#allocation6 + $0x1], 0 }
   0x4   :  { %13 = vsyncpa [#allocation4], 0 }
   0x5   :  { %15 = vsyncpa [#allocation4 + $0x1], 0  ;;  %s587_s9 = smov 0   ;;  %s589_s10 = smov 0  }
   0x6   :  { %s591_s11 = smov 0   ;;  %s593_s12 = smov 0  }
   0x7   :  { %s595_s13 = smov 0   ;;  %s597_s14 = smov 0  }
   0x8 LB: > { %s344_s15 = sadd.s32 4294967295, %s567_s14   ;;  %s345_s16 = sadd.s32 4294967294, %s567_s14   ;;  %s567_s14 = sphi %s597_s14, %s21_s14   ;;  %s563_s13 = sphi %s595_s13, %s765_s13   ;;  %s559_s12 = sphi %s593_s12, %s764_s12   ;;  %s555_s11 = sphi %s591_s11, %s763_s11   ;;  %s551_s10 = sphi %s589_s10, %s762_s10   ;;  %s547_s9 = sphi %s587_s9, %s761_s9  }
   0x9   : > { %s33_s17 = sadd.s32 1, %s563_s13  ;;  %s40_s18 = sadd.s32 1, %s555_s11 }
   0xa   : > { %p35_p0 = scmp.ge.s32.totalorder %s33_s17, 2  ;;  %p47_p1 = scmp.ne.s32.totalorder %s555_s11, %s551_s10 }
   0xb   : > { %p48_p2 = scmp.eq.s32.totalorder %s567_s14, 0  ;;  %p53_p3 = scmp.ne.s32.totalorder %s551_s10, %s547_s9 }
   0xc   : > { %s767_s17 = smov (%p35_p0, %s33_s17), 0  ;;  %p54_p5 = scmp.eq.s32.totalorder %s344_s15, 0 }
   0xd   : > { %p628_p4 = por %p48_p2, %p47_p1  ;;  %s37_s20 = ssub.s32 %s563_s13, %s767_s17 }
   0xe   : > { %p107_p6 = scmp.eq.s32.totalorder %s344_s15, 1  ;;  %p38_p7 = scmp.eq.s32.totalorder %s37_s20, 0 }
   0xf   : > { %p634_p8 = por %p54_p5, %p53_p3  ;;  %p113_p10 = scmp.eq.s32.totalorder %s345_s16, 1 }
  0x10   : > { %p638_p9 = por %p107_p6, %p47_p1  ;;  %p377_p13 = scmp.lt.s32.totalorder %s567_s14, 2 }
  0x11   : > { %s643_s23 = scalar_select %p38_p7, %s555_s11, %s40_s18  }
  0x12   : > { %p645_p11 = por %p113_p10, %p53_p3  ;;  %s652_s25 = sand.u32 1, %s555_s11  }
  0x13   : > { %s348_s26 = sshll.u32 %s652_s25, 1  ;;  %s349_s27 = sshll.u32 %s563_s13, 5 }
  0x14   : > { %s142_s30 = scalar_lea.hbm %s751_s0, %s349_s27  ;;  %s137_s3 = scalar_lea.vmem [#allocation2], %s348_s26 }
  0x15   : > { %s144_s4 = sshll.u32 %s137_s3, 4  ;;  %p661_p0 = pnand %p377_p13, %p628_p4  ;;  %s145_s4 = int_to_ptr.vmem [resolvable:$true] %s144_s4 }
  0x16   : > { %p352_p1 = scmp.ge.s32.totalorder %s567_s14, 1  ;;  %p168_p2 = scmp.lt.s32.totalorder %s567_s14, 3 }
  0x17   : > { %s134_s6 = scalar_lea.sflag [#allocation3], %s652_s25  ;;  %p429_p3 = pneg %p661_p0 }
  0x18   : > { %s440_s7 = scalar_lea.vmem %s145_s4, 32  ;;  %s569_s8 = smov [#allocation2]  }
  0x19   : > { %p441_p5 = scmp.ne.s32.totalorder %s145_s4, %s440_s7  ;;  %s445_s15 = sshll.u32 %s569_s8, 4  ;;  %s446_s15 = int_to_ptr.vmem [resolvable:$false] %s445_s15 }
  0x1a   : > { %s447_s16 = scalar_lea.vmem %s446_s15, 64  ;;  %p448_p4 = scmp.lt.s32.totalorder %s145_s4, %s446_s15 }
  0x1b   : > { %p443_p6 = pnand %p441_p5, %p429_p3  ;;  %p449_p10 = scmp.lt.s32.totalorder %s447_s16, %s440_s7 }
  0x1d   : > { %p444_p7 = pneg %p443_p6  ;;  %p450_p13 = por %p449_p10, %p448_p4 }
  0x1f   : > { %p451_p12 = pnand %p450_p13, %p444_p7 }
  0x21   : > { %454 = shalt.err (!%p451_p12)
}
  0x22   : > { %369 = dma.hbm_to_vmem [thread:$0]  (!%p661_p0), %s142_s30, 32, %s145_s4, %s134_s6  }
  0x23   : > { %p679_p5 = pnand %p352_p1, %p168_p2  ;;  %s350_s19 = sshll.u32 %s652_s25, 2 }
  0x24   : > { %s351_s20 = sshll.u32 %s563_s13, 6  ;;  %s155_s29 = scalar_lea.vmem [#allocation5], %s350_s19 }
  0x25   : > { %s161_s28 = scalar_lea.hbm %s752_s1, %s351_s20  ;;  %s163_s3 = sshll.u32 %s155_s29, 4  ;;  %s164_s3 = int_to_ptr.vmem [resolvable:$true] %s163_s3 }
  0x26   : > { %s152_s7 = scalar_lea.sflag [#allocation6], %s652_s25  ;;  %s468_s8 = scalar_lea.vmem %s164_s3, 64 }
  0x27   : > { %p469_p12 = scmp.ne.s32.totalorder %s164_s3, %s468_s8  ;;  %s570_s30 = smov [#allocation5]  }
  0x28   : > { %s473_s4 = sshll.u32 %s570_s30, 4  ;;  %s474_s4 = int_to_ptr.vmem [resolvable:$false] %s473_s4 }
  0x29   : > { %p471_p6 = pnand %p469_p12, %p429_p3  ;;  %s475_s6 = scalar_lea.vmem %s474_s4, 128 }
  0x2a   : > { %p476_p1 = scmp.lt.s32.totalorder %s164_s3, %s474_s4  ;;  %p477_p2 = scmp.lt.s32.totalorder %s475_s6, %s468_s8 }
  0x2b   : > { %p472_p7 = pneg %p471_p6 }
  0x2c   : > { %p478_p4 = por %p477_p2, %p476_p1 }
  0x2e   : > { %p479_p10 = pnand %p478_p4, %p472_p7 }
  0x30   : > { %482 = shalt.err (!%p479_p10)
}
  0x31   : > { %372 = dma.hbm_to_vmem [thread:$0]  (!%p661_p0), %s161_s28, 64, %s164_s3, %s152_s7  }
  0x32   : > { %172 = sbr.rel (%p679_p5) target bundleno = 84 (0x54), region = 28  ;;  %s697_s25 = sand.u32 (!%p679_p5), 1, %s551_s10  }
  0x33   : > { %s353_s15 = sshll.u32 (!%p679_p5), %s697_s25, 1  ;;  %s175_s16 = scalar_lea.sflag (!%p679_p5), [#allocation3], %s697_s25 }
  0x34   : > { %s178_s19 = scalar_lea.vmem (!%p679_p5), [#allocation2], %s353_s15 }
  0x37   : > { %534 = dma.done.wait (%p634_p8), %s175_s16, 32  }
  0x38   : > { %536 = vsyncadd (%p634_p8), %s175_s16, 4294967264  ;;  %s354_s5 = sshll.u32 %s697_s25, 2  ;;  %s184_s18 = scalar_lea.sflag [#allocation6], %s697_s25 }
  0x39   : > { %s187_s20 = scalar_lea.vmem [#allocation5], %s354_s5 }
  0x3a   : > { %538 = dma.done.wait (%p634_p8), %s184_s18, 64  }
  0x3b   : > { %540 = vsyncadd (%p634_p8), %s184_s18, 4294967232  ;;  %v215_v0 = vlaneseq  ;;  %v213_v4 = vld [vmem:[%s178_s19] sm:$0x3]  ;;  %v214_v5 = vld [vmem:[%s187_s20] sm:$0xf]  ;;  %s212_s26 = scalar_lea.vmem [#allocation7], %s354_s5 }
  0x3c   : > { %s241_s27 = sshll.u32 %s212_s26, 4  ;;  %s357_s28 = sshll.u32 %s559_s12, 6  ;;  %s242_s27 = int_to_ptr.vmem [resolvable:$true] %s241_s27 }
  0x3d   : > { %v216_v1 = vshrl.u32 %v215_v0, 7  ;;  %s239_s3 = scalar_lea.hbm %s753_s2, %s357_s28  ;;  %s227_s7 = scalar_lea.sflag [#allocation4], %s697_s25 }
  0x3e   : > { %s483_s8 = scalar_lea.vmem %s242_s27, 64  ;;  %s571_s30 = smov [#allocation7]  }
  0x3f   : > { %v217_v2 = vsub.s32 0, %v216_v1  ;;  %v222_v3 = vsub.s32 1, %v216_v1  ;;  %p484_p8 = scmp.ne.s32.totalorder %s242_s27, %s483_s8  ;;  %s487_s4 = sshll.u32 %s571_s30, 4  ;;  %s488_s4 = int_to_ptr.vmem [resolvable:$false] %s487_s4 }
  0x40   : > { %s489_s6 = scalar_lea.vmem %s488_s4, 128  ;;  %p490_p13 = scmp.lt.s32.totalorder %s242_s27, %s488_s4 }
  0x41   : > { %v218_v6 = vrot.slane %v213_v4, %v217_v2  ;;  %v223_v7 = vrot.slane %v213_v4, %v222_v3  ;;  %p485_p0 = pnand %p484_p8, %p638_p9  ;;  %p491_p5 = scmp.lt.s32.totalorder %s489_s6, %s483_s8 }
  0x43   : > { %v219_v8 = vmul.f32 %v218_v6, %v214_v5  ;;  %p486_p3 = pneg %p485_p0  ;;  %p492_p12 = por %p491_p5, %p490_p13 }
  0x45   : > { %v224_v9 = vadd.f32 %v223_v7, %v219_v8  ;;  %p493_p6 = pnand %p492_p12, %p486_p3 }
  0x47   : > { %225 = vst [vmem:[%s212_s26] sm:$0xf] %v224_v9 }
  0x48   : > { %496 = shalt.err (!%p493_p6)
}
  0x49   : > { %s497_s12 = scalar_lea.hbm %s239_s3, 64  ;;  %s501_s16 = scalar_lea.hbm %s753_s2, 128 }
  0x4a   : > { %p498_p7 = scmp.ne.s32.totalorder %s239_s3, %s497_s12  ;;  %p502_p4 = scmp.lt.s32.totalorder %s239_s3, %s753_s2 }
  0x4b   : > { %p503_p10 = scmp.lt.s32.totalorder %s501_s16, %s497_s12 }
  0x4c   : > { %p499_p1 = pnand %p498_p7, %p638_p9 }
  0x4d   : > { %p504_p8 = por %p503_p10, %p502_p4 }
  0x4e   : > { %p500_p2 = pneg %p499_p1 }
  0x50   : > { %p505_p0 = pnand %p504_p8, %p500_p2 }
  0x52   : > { %508 = shalt.err (!%p505_p0)
}
  0x53   : > { %364 = dma.vmem_to_hbm [thread:$0]  (%p638_p9), %s242_s27, 64, %s239_s3, %s227_s7  }
  0x54 PF: > { %s253_s18 = sand.u32 1, %s547_s9   ;;  %p760_p3 = scmp.ge.s32.totalorder %s567_s14, 2 }
  0x55   : > { %s254_s20 = scalar_lea.sflag [#allocation4], %s253_s18 }
  0x56   : > { %p374_p13 = pnand %p760_p3, %p645_p11 }
  0x58   : > { %p375_p5 = pneg %p374_p13 }
  0x5a   : > { %542 = dma.done.wait (%p375_p5), %s254_s20, 64  }
  0x5b   : > { %544 = vsyncadd (%p375_p5), %s254_s20, 4294967232  ;;  %s21_s14 = sadd.s32 1, %s567_s14   ;;  %s761_s9 = smov %s551_s10 }
  0x5c   : > { %p18_p12 = scmp.ge.s32.totalorder %s21_s14, 4   ;;  %s762_s10 = smov %s555_s11 }
  0x5d   : > { %s763_s11 = smov %s643_s23  ;;  %s764_s12 = smov %s563_s13 }
  0x5e   : > { %s765_s13 = smov %s767_s17  ;;  %20 = sbr.rel (!%p18_p12) target bundleno = 8 (0x8), region = 86 }
  0x63   :  { %259 = vsyncpa [#allocation3], 1 }
  0x64   :  { %261 = vsyncpa [#allocation3 + $0x1], 1 }
  0x65   :  { %262 = vsyncpa [#allocation6], 1 }
  0x66   :  { %264 = vsyncpa [#allocation6 + $0x1], 1 }
  0x67   :  { %265 = vsyncpa [#allocation4], 1 }
  0x68   :  { %267 = vsyncpa [#allocation4 + $0x1], 1 }

</bundles_post_ra>
